<compile_context>
chip_gen: v5e
topology: v5e:2x2
jax: 0.10.0
libtpu: 0.0.40
codegen_flags: <defaults>
</compile_context>

<pallas_src>
import functools

import jax
import jax.numpy as jnp
from jax.experimental import pallas as pl
from jax.experimental.pallas import tpu as pltpu


# ----------------------------------------------------------------------------
# Kernel A: fully-resident weights.  out = (x @ W1 + b1) @ W2 + b2 on one row tile.
# ----------------------------------------------------------------------------
def _mlp_fused_kernel(x_ref, w1_ref, b1_ref, w2_ref, b2_ref, out_ref, h_ref):
    # First matmul: bf16 x bf16 -> f32 accumulate, add f32 bias, stage as bf16.
    h_ref[...] = (
        jnp.dot(x_ref[...], w1_ref[...], preferred_element_type=jnp.float32)
        + b1_ref[...]
    ).astype(jnp.bfloat16)
    # Second matmul: bf16 x bf16 -> f32 accumulate, add f32 bias.
    out_ref[...] = (
        jnp.dot(h_ref[...], w2_ref[...], preferred_element_type=jnp.float32)
        + b2_ref[...]
    ).astype(out_ref.dtype)


# ----------------------------------------------------------------------------
# Kernel B: hidden-dim (K) tiled reduction.  Grid = (row tiles, hidden tiles).
# For each hidden tile: h_k = x @ W1[:, k] + b1[k];  acc += h_k @ W2[k, :].
# ----------------------------------------------------------------------------
def _mlp_ktiled_kernel(x_ref, w1_ref, b1_ref, w2_ref, b2_ref, out_ref,
                       acc_ref, h_ref):
    k = pl.program_id(1)

    @pl.when(k == 0)
    def _():
        acc_ref[...] = jnp.zeros_like(acc_ref)

    h_ref[...] = (
        jnp.dot(x_ref[...], w1_ref[...], preferred_element_type=jnp.float32)
        + b1_ref[...]
    ).astype(jnp.bfloat16)
    acc_ref[...] += jnp.dot(
        h_ref[...], w2_ref[...], preferred_element_type=jnp.float32
    )

    @pl.when(k == pl.num_programs(1) - 1)
    def _():
        out_ref[...] = (acc_ref[...] + b2_ref[...]).astype(out_ref.dtype)


# ----------------------------------------------------------------------------
# Wrapper
# ----------------------------------------------------------------------------
def mlp_forward(x, w1, b1, w2, b2, *, block_rows=256, hidden_block=None):
    """x: [N, D_in]; w1: [D_in, H]; b1: [H] or [1, H]; w2: [H, D_out]; b2: [D_out] or [1, D_out].

    hidden_block=None  -> weights stay fully VMEM-resident (small/medium MLPs).
    hidden_block=K     -> reduction grid over the hidden dim in K-wide tiles
                          (use when W1/W2 don't fit in VMEM; K must be a
                          multiple of 128 that divides H).
    """
    n, d_in = x.shape
    h_dim = w1.shape[1]
    d_out = w2.shape[1]

    # bf16 on the MXU, f32 biases / accumulation / output.
    x = x.astype(jnp.bfloat16)
    w1 = w1.astype(jnp.bfloat16)
    w2 = w2.astype(jnp.bfloat16)
    b1 = b1.astype(jnp.float32).reshape(1, h_dim)
    b2 = b2.astype(jnp.float32).reshape(1, d_out)

    # Row tile: as large as block_rows, multiple of 8 unless it covers all rows.
    tm = min(block_rows, n)
    if tm < n:
        tm = max(8, (tm // 8) * 8)
    grid_rows = pl.cdiv(n, tm)  # ragged last block handled by Pallas (no pad/slice)

    out_shape = jax.ShapeDtypeStruct((n, d_out), jnp.float32)

    if hidden_block is None:
        # -------- fully-resident-weights path --------
        est_bytes = (
            (d_in * h_dim + h_dim * d_out) * 2          # bf16 weights, Buffered(1)
            + (h_dim + d_out) * 4 * 8                   # biases (sublane-padded)
            + 2 * tm * d_in * 2 + 2 * tm * d_out * 4    # double-buffered x / out tiles
            + tm * h_dim * 2                            # h scratch (bf16)
        )
        vmem_limit = int(min(max(2 * est_bytes, 32 * 1024 * 1024), 64 * 1024 * 1024))

        return pl.pallas_call(
            _mlp_fused_kernel,
            out_shape=out_shape,
            grid_spec=pltpu.PrefetchScalarGridSpec(
                num_scalar_prefetch=0,
                grid=(grid_rows,),
                in_specs=[
                    # row tile of the input (default double-buffering)
                    pl.BlockSpec((tm, d_in), lambda i: (0, 0) if False else (i, 0)),
                    # constant-index operands: fetched once, single-buffered
                    pl.BlockSpec((d_in, h_dim), lambda i: (0, 0),
                                 pipeline_mode=pl.Buffered(1)),
                    pl.BlockSpec((1, h_dim), lambda i: (0, 0),
                                 pipeline_mode=pl.Buffered(1)),
                    pl.BlockSpec((h_dim, d_out), lambda i: (0, 0),
                                 pipeline_mode=pl.Buffered(1)),
                    pl.BlockSpec((1, d_out), lambda i: (0, 0),
                                 pipeline_mode=pl.Buffered(1)),
                ],
                out_specs=pl.BlockSpec((tm, d_out), lambda i: (i, 0)),
                scratch_shapes=[pltpu.VMEM((tm, h_dim), jnp.bfloat16)],
            ),
            compiler_params=pltpu.CompilerParams(
                dimension_semantics=("parallel",),  # shard row tiles across TCs (v7x)
                vmem_limit_bytes=vmem_limit,
            ),
        )(x, w1, b1, w2, b2)

    # -------- K-tiled (hidden-dim reduction) path --------
    th = int(hidden_block)
    assert th % 128 == 0 and h_dim % th == 0, (
        "hidden_block must be a multiple of 128 that divides the hidden dim")
    grid_h = h_dim // th

    est_bytes = (
        2 * (d_in * th + th * d_out) * 2              # double-buffered weight tiles
        + (th + d_out) * 4 * 8                        # biases (sublane-padded)
        + 2 * tm * d_in * 2 + 2 * tm * d_out * 4      # double-buffered x / out tiles
        + tm * d_out * 4 + tm * th * 2                # acc (f32) + h (bf16) scratch
    )
    vmem_limit = int(min(max(2 * est_bytes, 32 * 1024 * 1024), 64 * 1024 * 1024))

    return pl.pallas_call(
        _mlp_ktiled_kernel,
        out_shape=out_shape,
        grid_spec=pltpu.PrefetchScalarGridSpec(
            num_scalar_prefetch=0,
            grid=(grid_rows, grid_h),  # reduction axis last
            in_specs=[
                pl.BlockSpec((tm, d_in), lambda i, k: (i, 0)),
                pl.BlockSpec((d_in, th), lambda i, k: (0, k)),
                pl.BlockSpec((1, th), lambda i, k: (0, k)),
                pl.BlockSpec((th, d_out), lambda i, k: (k, 0)),
                pl.BlockSpec((1, d_out), lambda i, k: (0, 0),
                             pipeline_mode=pl.Buffered(1)),
            ],
            out_specs=pl.BlockSpec((tm, d_out), lambda i, k: (i, 0)),
            scratch_shapes=[
                pltpu.VMEM((tm, d_out), jnp.float32),   # accumulator
                pltpu.VMEM((tm, th), jnp.bfloat16),     # staged hidden tile
            ],
        ),
        compiler_params=pltpu.CompilerParams(
            dimension_semantics=("parallel", "arbitrary"),
            vmem_limit_bytes=vmem_limit,
        ),
    )(x, w1, b1, w2, b2)


# ----------------------------------------------------------------------------
# Parameter init (nn.Linear default: U(-1/sqrt(fan_in), 1/sqrt(fan_in)));
# weights stored pre-transposed ([in, out]) and in bf16, biases in f32.
# ----------------------------------------------------------------------------
def init_mlp_params(key, input_size, hidden_size, output_size):
    k1, k2, k3, k4 = jax.random.split(key, 4)
    lim1 = 1.0 / jnp.sqrt(jnp.float32(input_size))
    lim2 = 1.0 / jnp.sqrt(jnp.float32(hidden_size))
    return {
        "w1": jax.random.uniform(k1, (input_size, hidden_size), jnp.float32,
                                 -lim1, lim1).astype(jnp.bfloat16),
        "b1": jax.random.uniform(k2, (1, hidden_size), jnp.float32, -lim1, lim1),
        "w2": jax.random.uniform(k3, (hidden_size, output_size), jnp.float32,
                                 -lim2, lim2).astype(jnp.bfloat16),
        "b2": jax.random.uniform(k4, (1, output_size), jnp.float32, -lim2, lim2),
    }


@jax.jit
def mlp_apply(params, x):
    return mlp_forward(x, params["w1"], params["b1"], params["w2"], params["b2"])


@functools.partial(jax.jit, static_argnames=("hidden_block",))
def mlp_apply_ktiled(params, x, hidden_block=128):
    return mlp_forward(x, params["w1"], params["b1"], params["w2"], params["b2"],
                       hidden_block=hidden_block)


def mlp_reference(params, x):
    # Mirror the kernel's quantization (bf16 operands, f32 accumulate).
    xb = x.astype(jnp.bfloat16).astype(jnp.float32)
    w1 = params["w1"].astype(jnp.float32)
    w2 = params["w2"].astype(jnp.float32)
    h = xb @ w1 + params["b1"]
    h = h.astype(jnp.bfloat16).astype(jnp.float32)
    return h @ w2 + params["b2"]


# TODO(synk): dropout_rate is accepted by the PyTorch __init__ but never used in
# forward(), so no dropout op is implemented here.

if __name__ == "__main__":
    # Small shapes; N deliberately not a tile multiple to exercise the ragged
    # last row block, hidden=256 to exercise two reduction steps in the K-tiled path.
    N, D_IN, HIDDEN, D_OUT = 300, 64, 256, 128

    key = jax.random.PRNGKey(0)
    k_param, k_x = jax.random.split(key)

    params = init_mlp_params(k_param, D_IN, HIDDEN, D_OUT)
    x = jax.random.normal(k_x, (N, D_IN), jnp.float32)

    ref = mlp_reference(params, x)

    # Path 1: fully-resident weights.
    out = jax.block_until_ready(mlp_apply(params, x))
    assert out.shape == ref.shape == (N, D_OUT)
    assert jnp.allclose(out, ref, atol=5e-2, rtol=5e-2)

    # Path 2: hidden-dim-tiled reduction (for weights too large to stay resident).
    out_k = jax.block_until_ready(mlp_apply_ktiled(params, x, hidden_block=128))
    assert out_k.shape == ref.shape
    assert jnp.allclose(out_k, ref, atol=5e-2, rtol=5e-2)

    print("KERNEL_OK")
</pallas_src>

<mosaic_0001>
module attributes {stable_mosaic.version = 11 : i64} {
  func.func @_mlp_fused_kernel(%arg0: i32, %arg1: memref<256x64xbf16, #tpu.memory_space<vmem>>, %arg2: memref<64x256xbf16, #tpu.memory_space<vmem>>, %arg3: memref<1x256xf32, #tpu.memory_space<vmem>>, %arg4: memref<256x128xbf16, #tpu.memory_space<vmem>>, %arg5: memref<1x128xf32, #tpu.memory_space<vmem>>, %arg6: memref<256x128xf32, #tpu.memory_space<vmem>>, %arg7: memref<256x256xbf16, #tpu.memory_space<vmem>>) attributes {dimension_semantics = [#tpu.dimension_semantics<parallel>], iteration_bounds = array<i64: 2>, scalar_prefetch = 0 : i64, scratch_operands = 1 : i64, tpu.core_type = #tpu.core_type<tc>, window_params = [{transform_indices = @transform_0, window_bounds = array<i64: 256, 64>}, {pipeline_mode = #tpu.pipeline_mode<synchronous>, transform_indices = @transform_1, window_bounds = array<i64: 64, 256>}, {pipeline_mode = #tpu.pipeline_mode<synchronous>, transform_indices = @transform_2, window_bounds = array<i64: 1, 256>}, {pipeline_mode = #tpu.pipeline_mode<synchronous>, transform_indices = @transform_3, window_bounds = array<i64: 256, 128>}, {pipeline_mode = #tpu.pipeline_mode<synchronous>, transform_indices = @transform_4, window_bounds = array<i64: 1, 128>}, {transform_indices = @transform_5, window_bounds = array<i64: 256, 128>}]} {
    %c0 = arith.constant 0 : index
    %c0_0 = arith.constant 0 : index
    %0 = vector.load %arg1[%c0, %c0_0] : memref<256x64xbf16, #tpu.memory_space<vmem>>, vector<256x64xbf16>
    %c0_1 = arith.constant 0 : index
    %c0_2 = arith.constant 0 : index
    %1 = vector.load %arg2[%c0_1, %c0_2] : memref<64x256xbf16, #tpu.memory_space<vmem>>, vector<64x256xbf16>
    %cst = arith.constant dense<0.000000e+00> : vector<256x256xf32>
    %2 = tpu.matmul %0, %1, %cst {dimension_numbers = #tpu.dot_dimension_numbers<[1], [0], [0], [1], [0, 0, 1, 1], [], []>} : vector<256x64xbf16>, vector<64x256xbf16>, vector<256x256xf32> -> vector<256x256xf32>
    %c0_3 = arith.constant 0 : index
    %c0_4 = arith.constant 0 : index
    %3 = vector.load %arg3[%c0_3, %c0_4] : memref<1x256xf32, #tpu.memory_space<vmem>>, vector<1x256xf32>
    %4 = vector.broadcast %3 : vector<1x256xf32> to vector<256x256xf32>
    %5 = arith.addf %2, %4 : vector<256x256xf32>
    %6 = arith.truncf %5 : vector<256x256xf32> to vector<256x256xbf16>
    %c0_5 = arith.constant 0 : index
    %c0_6 = arith.constant 0 : index
    %7 = vector.load %arg7[%c0_5, %c0_6] : memref<256x256xbf16, #tpu.memory_space<vmem>>, vector<256x256xbf16>
    tpu.vector_store %arg7[%c0_5, %c0_6], %6 {strides = array<i32>} : memref<256x256xbf16, #tpu.memory_space<vmem>>, vector<256x256xbf16>,
    %c0_7 = arith.constant 0 : index
    %c0_8 = arith.constant 0 : index
    %8 = vector.load %arg7[%c0_7, %c0_8] : memref<256x256xbf16, #tpu.memory_space<vmem>>, vector<256x256xbf16>
    %c0_9 = arith.constant 0 : index
    %c0_10 = arith.constant 0 : index
    %9 = vector.load %arg4[%c0_9, %c0_10] : memref<256x128xbf16, #tpu.memory_space<vmem>>, vector<256x128xbf16>
    %cst_11 = arith.constant dense<0.000000e+00> : vector<256x128xf32>
    %10 = tpu.matmul %8, %9, %cst_11 {dimension_numbers = #tpu.dot_dimension_numbers<[1], [0], [0], [1], [0, 0, 1, 1], [], []>} : vector<256x256xbf16>, vector<256x128xbf16>, vector<256x128xf32> -> vector<256x128xf32>
    %c0_12 = arith.constant 0 : index
    %c0_13 = arith.constant 0 : index
    %11 = vector.load %arg5[%c0_12, %c0_13] : memref<1x128xf32, #tpu.memory_space<vmem>>, vector<1x128xf32>
    %12 = vector.broadcast %11 : vector<1x128xf32> to vector<256x128xf32>
    %13 = arith.addf %10, %12 : vector<256x128xf32>
    %c0_14 = arith.constant 0 : index
    %c0_15 = arith.constant 0 : index
    %14 = vector.load %arg6[%c0_14, %c0_15] : memref<256x128xf32, #tpu.memory_space<vmem>>, vector<256x128xf32>
    tpu.vector_store %arg6[%c0_14, %c0_15], %13 {strides = array<i32>} : memref<256x128xf32, #tpu.memory_space<vmem>>, vector<256x128xf32>,
    return
  }
  func.func @transform_0(%arg0: i32) -> (i32, i32) {
    %c0_i32 = arith.constant 0 : i32
    %c0_i32_0 = arith.constant 0 : i32
    return %arg0, %c0_i32 : i32, i32
  }
  func.func @transform_1(%arg0: i32) -> (i32, i32) {
    %c0_i32 = arith.constant 0 : i32
    %c0_i32_0 = arith.constant 0 : i32
    %c0_i32_1 = arith.constant 0 : i32
    return %c0_i32, %c0_i32_0 : i32, i32
  }
  func.func @transform_2(%arg0: i32) -> (i32, i32) {
    %c0_i32 = arith.constant 0 : i32
    %c0_i32_0 = arith.constant 0 : i32
    %c0_i32_1 = arith.constant 0 : i32
    return %c0_i32, %c0_i32_0 : i32, i32
  }
  func.func @transform_3(%arg0: i32) -> (i32, i32) {
    %c0_i32 = arith.constant 0 : i32
    %c0_i32_0 = arith.constant 0 : i32
    %c0_i32_1 = arith.constant 0 : i32
    return %c0_i32, %c0_i32_0 : i32, i32
  }
  func.func @transform_4(%arg0: i32) -> (i32, i32) {
    %c0_i32 = arith.constant 0 : i32
    %c0_i32_0 = arith.constant 0 : i32
    %c0_i32_1 = arith.constant 0 : i32
    return %c0_i32, %c0_i32_0 : i32, i32
  }
  func.func @transform_5(%arg0: i32) -> (i32, i32) {
    %c0_i32 = arith.constant 0 : i32
    %c0_i32_0 = arith.constant 0 : i32
    return %arg0, %c0_i32 : i32, i32
  }
}

</mosaic_0001>

<bundles_post_ra>
// kernel: mlp_apply.1
= control target key start
LH: loop header
LB: loop body
LE: loop exit
PB: predicated region body
PF: predicated region fallthrough
CT: control target
= control target key end

     0   :  { %10 = vsyncpa [#allocation4], 0  ;;  %s2295_s0 = inlined_call_operand.vmem [shape: bf16[300,64], index: 0, kind: input, shape index: {}]   ;;  %s2296_s1 = inlined_call_operand.vmem [shape: bf16[64,256], index: 1, kind: input, shape index: {}]   ;;  %s2297_s2 = inlined_call_operand.vmem [shape: f32[1,256], index: 2, kind: input, shape index: {}]   ;;  %s2298_s3 = inlined_call_operand.vmem [shape: bf16[256,128], index: 3, kind: input, shape index: {}]   ;;  %s2299_s4 = inlined_call_operand.vmem [shape: f32[1,128], index: 4, kind: input, shape index: {}]   ;;  %s2300_s5 = inlined_call_operand.hbm [shape: f32[300,128], index: 5, kind: output, shape index: {}]  }
   0x1   :  { %12 = vsyncpa [#allocation4 + $0x1], 0  ;;  %s1885_s18 = smov 0   ;;  %s1887_s19 = smov 0  }
   0x2   :  { %s1889_s20 = smov 0   ;;  %s1891_s21 = smov 0  }
   0x3 LB: > { %s1906_s22 = sadd.s32 4294967295, %s1850_s21   ;;  %s1327_s23 = sadd.s32 4294967294, %s1850_s21   ;;  %s1850_s21 = sphi %s1891_s21, %s2307_s21   ;;  %s1846_s20 = sphi %s1889_s20, %s2306_s20   ;;  %s1842_s19 = sphi %s1887_s19, %s2305_s19   ;;  %s1838_s18 = sphi %s1885_s18, %s2304_s18  }
   0x4   : > { %s1910_s24 = sadd.s32 1, %s1850_s21   ;;  %s135_s25 = sadd.s32 1, %s1846_s20 }
   0x5   : > { %s132_s26 = ssub.s32 %s1850_s21, %s1910_s24  ;;  %p145_p0 = scmp.ne.s32.totalorder %s1846_s20, %s1842_s19 }
   0x6   : > { %p133_p1 = scmp.eq.s32.totalorder %s132_s26, 0  ;;  %p146_p2 = scmp.eq.s32.totalorder %s1906_s22, 1 }
   0x7   : > { %p151_p3 = scmp.ne.s32.totalorder %s1842_s19, %s1838_s18  ;;  %p152_p4 = scmp.eq.s32.totalorder %s1327_s23, 1 }
   0x8   : > { %s1921_s27 = scalar_select %p133_p1, %s1846_s20, %s135_s25  }
   0x9   : > { %p1923_p5 = por %p146_p2, %p145_p0  ;;  %p1927_p6 = por %p152_p4, %p151_p3 }
   0xa   : > { %p1330_p7 = scmp.ge.s32.totalorder %s1850_s21, 1  ;;  %p199_p8 = scmp.lt.s32.totalorder %s1850_s21, 3 }
   0xc   : > { %p200_p9 = pnand %p1330_p7, %p199_p8 }
   0xd   : > { %s1970_s13 = sshll.u32 (!%p200_p9), %s1906_s22, 5 }
   0xe   : > { %203 = sbr.rel (%p200_p9) target bundleno = 602 (0x25a), region = 40  ;;  %p236_p10 = scmp.lt.s32.totalorder (!%p200_p9), %s1970_s13, 37 }
  0x13   : > { %v1424_v0 = vld [vmem:[%s2296_s1 + $0x30] sm:$0xf]  ;;  %v1686_v1 = vld [vmem:[%s2296_s1 + $0x34] sm:$0xf0]  ;;  %v1685_v2 = vld [vmem:[%s2296_s1 + $0x34] sm:$0xf] }
  0x14   : > { %v1425_v3 = vor.u32 %v1686_v1, %v1424_v0  ;;  %v1426_v4 = vld [vmem:[%s2296_s1 + $0x38] sm:$0xf0]  ;;  %v1416_v5 = vld [vmem:[%s2296_s1 + $0x20] sm:$0xf]  ;;  %v1684_v6 = vld [vmem:[%s2296_s1 + $0x24] sm:$0xf0] }
  0x15   : > { %v1429_v7 = vor.u32 %v1685_v2, %v1426_v4  ;;  %v1683_v8 = vld [vmem:[%s2296_s1 + $0x24] sm:$0xf]  ;;  %v1418_v9 = vld [vmem:[%s2296_s1 + $0x28] sm:$0xf0]  ;;  %v1417_v10 = vor.u32 %v1684_v6, %v1416_v5  ;;  %v1408_v12 = vld [vmem:[%s2296_s1 + $0x10] sm:$0xf] }
  0x16   : > { %470 = vmatpush.bf16.msra.mxu0 %v1425_v3  ;;  %v1421_v11 = vor.u32 %v1683_v8, %v1418_v9  ;;  %v1682_v13 = vld [vmem:[%s2296_s1 + $0x14] sm:$0xf0]  ;;  %v1681_v14 = vld [vmem:[%s2296_s1 + $0x14] sm:$0xf]  ;;  %v1410_v15 = vld [vmem:[%s2296_s1 + $0x18] sm:$0xf0] }
  0x17   : > { %559 = vmatpush.bf16.msra.mxu1 %v1429_v7  ;;  %v1409_v16 = vor.u32 %v1682_v13, %v1408_v12  ;;  %v1413_v17 = vor.u32 %v1681_v14, %v1410_v15  ;;  %v1400_v18 = vld [vmem:[%s2296_s1] sm:$0xf]  ;;  %v1680_v19 = vld [vmem:[%s2296_s1 + $0x4] sm:$0xf0]  ;;  %s237_s23 = scalar_select %p236_p10, %s1970_s13, 37  ;;  %vm417_vm0 = vcmask 523264  }
  0x18   : > { %v1679_v20 = vld [vmem:[%s2296_s1 + $0x4] sm:$0xf]  ;;  %v1402_v21 = vld [vmem:[%s2296_s1 + $0x8] sm:$0xf0]  ;;  %v1401_v22 = vor.u32 %v1680_v19, %v1400_v18  ;;  %v1726_v30 = vld [vmem:[%s2298_s3 + $0x38] sm:$0xff] }
  0x19   : > { %s1333_s7 = sshll.u32 %s237_s23, 2  ;;  %v1405_v23 = vor.u32 %v1679_v20, %v1402_v21  ;;  %v1734_v31 = vld [vmem:[%s2298_s3 + $0x78] sm:$0xff]  ;;  %1032 = vmatpush.bf16.msra.mxu2 %v1726_v30  ;;  %v1725_v32 = vld [vmem:[%s2298_s3 + $0x30] sm:$0xff]  ;;  %v1724_v35 = vld [vmem:[%s2298_s3 + $0x28] sm:$0xff]  ;;  %s228_s23 = sand.u32 1, %s1842_s19  }
  0x1a   : > { %471 = vmatpush.bf16.msra.mxu0 %v1417_v10  ;;  %s1989_s10 = scalar_lea.vmem %s2295_s0, %s1333_s7  ;;  %1121 = vmatpush.bf16.msra.mxu3 %v1734_v31  ;;  %v1733_v33 = vld [vmem:[%s2298_s3 + $0x70] sm:$0xff]  ;;  %v1732_v36 = vld [vmem:[%s2298_s3 + $0x68] sm:$0xff]  ;;  %v1723_v37 = vld [vmem:[%s2298_s3 + $0x20] sm:$0xff]  ;;  %s1331_s26 = sshll.u32 %s228_s23, 8 }
  0x1b   : > { %560 = vmatpush.bf16.msra.mxu1 %v1421_v11  ;;  %v1663_v24 = vld [vmem:[%s1989_s10] sm:$0xff]  ;;  %v1664_v25 = vld [vmem:[%s1989_s10 + $0x8] sm:$0xff]  ;;  %v1665_v26 = vld [vmem:[%s1989_s10 + $0x10] sm:$0xff]  ;;  %s2143_s30 = scalar_lea.vmem [#allocation3], %s1331_s26  ;;  %s2234_s6 = scalar_lea.sflag [#allocation4], %s228_s23 }
  0x1c   : > { %v1666_v27 = vld [vmem:[%s1989_s10 + $0x18] sm:$0xff]  ;;  %v1667_v28 = vld [vmem:[%s1989_s10 + $0x20] sm:$0xff]  ;;  %v1668_v29 = vld [vmem:[%s1989_s10 + $0x28] sm:$0xff]  ;;  %s1251_s7 = ssub.s32 (%p1923_p5), 38, %s1970_s13 }
  0x1d   : > { %1033 = vmatpush.bf16.msra.mxu2 %v1725_v32  ;;  %v1669_v34 = vld [vmem:[%s1989_s10 + $0x30] sm:$0xff]  ;;  %v1731_v38 = vld [vmem:[%s2298_s3 + $0x60] sm:$0xff]  ;;  %v1722_v39 = vld [vmem:[%s2298_s3 + $0x18] sm:$0xff]  ;;  %p1252_p11 = scmp.lt.s32.totalorder (%p1923_p5), %s1251_s7, 32 }
  0x1e   : > { %472 = vmatpush.bf16.msra.mxu0 %v1409_v16  ;;  %1122 = vmatpush.bf16.msra.mxu3 %v1733_v33  ;;  %v1730_v40 = vld [vmem:[%s2298_s3 + $0x58] sm:$0xff]  ;;  %v1721_v41 = vld [vmem:[%s2298_s3 + $0x10] sm:$0xff]  ;;  %v1720_v44 = vld [vmem:[%s2298_s3 + $0x8] sm:$0xff] }
  0x1f   : > { %561 = vmatpush.bf16.msra.mxu1 %v1413_v17  ;;  %v1729_v42 = vld [vmem:[%s2298_s3 + $0x50] sm:$0xff]  ;;  %v1670_v43 = vld [vmem:[%s1989_s10 + $0x38] sm:$0xff]  ;;  %v1728_v45 = vld [vmem:[%s2298_s3 + $0x48] sm:$0xff] }
  0x20   : > { %v1719_v46 = vld [vmem:[%s2298_s3] sm:$0xff]  ;;  %v1672_v62 = vld [vmem:[%s1989_s10 + $0x48] sm:$0xff]  ;;  %v1673_v15 = vld [vmem:[%s1989_s10 + $0x50] sm:$0xff] }
  0x21   : > { %1034 = vmatpush.bf16.msra.mxu2 %v1724_v35  ;;  %v1727_v47 = vld [vmem:[%s2298_s3 + $0x40] sm:$0xff]  ;;  %v1674_v32 = vld [vmem:[%s1989_s10 + $0x58] sm:$0xff] }
  0x22   : > { %473 = vmatpush.bf16.msra.mxu0 %v1401_v22  ;;  %1123 = vmatpush.bf16.msra.mxu3 %v1732_v36  ;;  %v291_v48 = vld [vmem:[%s2297_s2] sm:$0x3] }
  0x23   : > { %562 = vmatpush.bf16.msra.mxu1 %v1405_v23  ;;  %v2066_v49 = vperm.slane %v291_v48, 0  ;;  %v2068_v50 = vperm.slane %v291_v48, 1  ;;  %v1671_v51 = vld [vmem:[%s1989_s10 + $0x40] sm:$0xff] }
  0x25   : > { %1430 = vmatmul.msk.bf16.vlgmr.msra.gmra.mxu0 %vm417_vm0, %v1663_v24  ;;  %1035 = vmatpush.bf16.msra.mxu2 %v1723_v37 }
  0x26   : > { %1446 = vmatmul.msk.bf16.vlgmr.msra.gmra.mxu1 %vm417_vm0, %v1663_v24  ;;  %1124 = vmatpush.bf16.msra.mxu3 %v1731_v38 }
  0x29   : > { %1036 = vmatpush.bf16.msra.mxu2 %v1722_v39 }
  0x2a   : > { %1125 = vmatpush.bf16.msra.mxu3 %v1730_v40 }
  0x2d   : > { %1037 = vmatpush.bf16.msra.mxu2 %v1721_v41 }
  0x2e   : > { %1126 = vmatpush.bf16.msra.mxu3 %v1729_v42 }
  0x31   : > { %1038 = vmatpush.bf16.msra.mxu2 %v1720_v44 }
  0x32   : > { %1127 = vmatpush.bf16.msra.mxu3 %v1728_v45 }
  0x35   : > { %1431 = vmatmul.msk.bf16.gmra.mxu0 %vm417_vm0, %v1664_v25  ;;  %1039 = vmatpush.bf16.msra.mxu2 %v1719_v46 }
  0x36   : > { %1447 = vmatmul.msk.bf16.gmra.mxu1 %vm417_vm0, %v1664_v25  ;;  %1128 = vmatpush.bf16.msra.mxu3 %v1727_v47 }
  0x45   : > { %1432 = vmatmul.msk.bf16.gmra.mxu0 %vm417_vm0, %v1665_v26 }
  0x46   : > { %1448 = vmatmul.msk.bf16.gmra.mxu1 %vm417_vm0, %v1665_v26 }
  0x55   : > { %1433 = vmatmul.msk.bf16.gmra.mxu0 %vm417_vm0, %v1666_v27 }
  0x56   : > { %1449 = vmatmul.msk.bf16.gmra.mxu1 %vm417_vm0, %v1666_v27 }
  0x65   : > { %1434 = vmatmul.msk.bf16.gmra.mxu0 %vm417_vm0, %v1667_v28 }
  0x66   : > { %1450 = vmatmul.msk.bf16.gmra.mxu1 %vm417_vm0, %v1667_v28 }
  0x75   : > { %1435 = vmatmul.msk.bf16.gmra.mxu0 %vm417_vm0, %v1668_v29 }
  0x76   : > { %1451 = vmatmul.msk.bf16.gmra.mxu1 %vm417_vm0, %v1668_v29 }
  0x85   : > { %1436 = vmatmul.msk.bf16.gmra.mxu0 %vm417_vm0, %v1669_v34 }
  0x86   : > { %1452 = vmatmul.msk.bf16.gmra.mxu1 %vm417_vm0, %v1669_v34 }
  0x95   : > { %1437 = vmatmul.msk.bf16.gmra.mxu0 %vm417_vm0, %v1670_v43 }
  0x96   : > { %1453 = vmatmul.msk.bf16.gmra.mxu1 %vm417_vm0, %v1670_v43 }
  0xa2   : > { %v475_v52 = vpop.f32.mrf.mxu0 }
  0xa3   : > { %v476_v53 = vadd.f32 %v475_v52, %v2066_v49  ;;  %v564_v54 = vpop.f32.mrf.mxu1 }
  0xa4   : > { %v565_v55 = vadd.f32 %v564_v54, %v2068_v50 }
  0xa5   : > { %1438 = vmatmul.msk.bf16.gmra.mxu0 %vm417_vm0, %v1671_v51 }
  0xa6   : > { %v644_v56 = vpack.c.bf16 %v565_v55, %v476_v53  ;;  %1454 = vmatmul.msk.bf16.gmra.mxu1 %vm417_vm0, %v1671_v51  ;;  %v1675_v51 = vld [vmem:[%s1989_s10 + $0x60] sm:$0xff] }
  0xa8   : > { %676 = vst [vmem:[#allocation2] sm:$0xff] %v644_v56 }
  0xaa   : > { %v477_v57 = vpop.f32.mrf.mxu0 }
  0xab   : > { %v478_v58 = vadd.f32 %v477_v57, %v2066_v49  ;;  %v566_v59 = vpop.f32.mrf.mxu1 }
  0xac   : > { %v567_v60 = vadd.f32 %v566_v59, %v2068_v50 }
  0xae   : > { %v645_v61 = vpack.c.bf16 %v567_v60, %v478_v58 }
  0xaf   : > { %v1464_v4 = vld [vmem:[#allocation2] sm:$0xf]  ;;  %v1687_v6 = vld [vmem:[#allocation2 + $0x4] sm:$0xf] }
  0xb0   : > { %677 = vst [vmem:[#allocation2 + $0x8] sm:$0xff] %v645_v61 }
  0xb2   : > { %v480_v63 = vpop.f32.mrf.mxu0 }
  0xb3   : > { %v481_v0 = vadd.f32 %v480_v63, %v2066_v49  ;;  %v569_v1 = vpop.f32.mrf.mxu1 }
  0xb4   : > { %v570_v2 = vadd.f32 %v569_v1, %v2068_v50 }
  0xb5   : > { %1439 = vmatmul.msk.bf16.gmra.mxu0 %vm417_vm0, %v1672_v62 }
  0xb6   : > { %v646_v3 = vpack.c.bf16 %v570_v2, %v481_v0  ;;  %1455 = vmatmul.msk.bf16.gmra.mxu1 %vm417_vm0, %v1672_v62 }
  0xb7   : > { %v1688_v5 = vld [vmem:[#allocation2 + $0x4] sm:$0xf0]  ;;  %v1466_v7 = vld [vmem:[#allocation2 + $0x8] sm:$0xf0] }
  0xb8   : > { %678 = vst [vmem:[#allocation2 + $0x10] sm:$0xff] %v646_v3  ;;  %v1465_v8 = vor.u32 %v1688_v5, %v1464_v4  ;;  %v1469_v9 = vor.u32 %v1687_v6, %v1466_v7  ;;  %v1676_v4 = vld [vmem:[%s1989_s10 + $0x68] sm:$0xff] }
  0xba   : > { %1040 = vmatmul.bf16.vlgmr.msra.gmra.mxu2 %v1465_v8  ;;  %1129 = vmatmul.bf16.vlgmr.msra.gmra.mxu3 %v1469_v9  ;;  %v482_v10 = vpop.f32.mrf.mxu0 }
  0xbb   : > { %v483_v11 = vadd.f32 %v482_v10, %v2066_v49  ;;  %v571_v12 = vpop.f32.mrf.mxu1 }
  0xbc   : > { %v572_v13 = vadd.f32 %v571_v12, %v2068_v50 }
  0xbe   : > { %v647_v14 = vpack.c.bf16 %v572_v13, %v483_v11 }
  0xbf   : > { %v1472_v21 = vld [vmem:[#allocation2 + $0x10] sm:$0xf]  ;;  %v1689_v23 = vld [vmem:[#allocation2 + $0x14] sm:$0xf] }
  0xc0   : > { %679 = vst [vmem:[#allocation2 + $0x18] sm:$0xff] %v647_v14 }
  0xc2   : > { %v485_v16 = vpop.f32.mrf.mxu0 }
  0xc3   : > { %v486_v17 = vadd.f32 %v485_v16, %v2066_v49  ;;  %v574_v18 = vpop.f32.mrf.mxu1 }
  0xc4   : > { %v575_v19 = vadd.f32 %v574_v18, %v2068_v50 }
  0xc5   : > { %1440 = vmatmul.msk.bf16.gmra.mxu0 %vm417_vm0, %v1673_v15 }
  0xc6   : > { %v648_v20 = vpack.c.bf16 %v575_v19, %v486_v17  ;;  %1456 = vmatmul.msk.bf16.gmra.mxu1 %vm417_vm0, %v1673_v15 }
  0xc7   : > { %v1690_v22 = vld [vmem:[#allocation2 + $0x14] sm:$0xf0]  ;;  %v1474_v24 = vld [vmem:[#allocation2 + $0x18] sm:$0xf0] }
  0xc8   : > { %680 = vst [vmem:[#allocation2 + $0x20] sm:$0xff] %v648_v20  ;;  %v1473_v25 = vor.u32 %v1690_v22, %v1472_v21  ;;  %v1477_v26 = vor.u32 %v1689_v23, %v1474_v24  ;;  %v1677_v21 = vld [vmem:[%s1989_s10 + $0x70] sm:$0xff] }
  0xca   : > { %1045 = vmatmul.bf16.gmra.mxu2 %v1473_v25  ;;  %1134 = vmatmul.bf16.gmra.mxu3 %v1477_v26  ;;  %v487_v27 = vpop.f32.mrf.mxu0 }
  0xcb   : > { %v488_v28 = vadd.f32 %v487_v27, %v2066_v49  ;;  %v576_v29 = vpop.f32.mrf.mxu1 }
  0xcc   : > { %v577_v30 = vadd.f32 %v576_v29, %v2068_v50 }
  0xce   : > { %v649_v31 = vpack.c.bf16 %v577_v30, %v488_v28 }
  0xcf   : > { %v1480_v38 = vld [vmem:[#allocation2 + $0x20] sm:$0xf]  ;;  %v1691_v40 = vld [vmem:[#allocation2 + $0x24] sm:$0xf] }
  0xd0   : > { %681 = vst [vmem:[#allocation2 + $0x28] sm:$0xff] %v649_v31 }
  0xd2   : > { %v490_v33 = vpop.f32.mrf.mxu0 }
  0xd3   : > { %v491_v34 = vadd.f32 %v490_v33, %v2066_v49  ;;  %v579_v35 = vpop.f32.mrf.mxu1 }
  0xd4   : > { %v580_v36 = vadd.f32 %v579_v35, %v2068_v50 }
  0xd5   : > { %1441 = vmatmul.msk.bf16.gmra.mxu0 %vm417_vm0, %v1674_v32 }
  0xd6   : > { %v650_v37 = vpack.c.bf16 %v580_v36, %v491_v34  ;;  %1457 = vmatmul.msk.bf16.gmra.mxu1 %vm417_vm0, %v1674_v32 }
  0xd7   : > { %v1692_v39 = vld [vmem:[#allocation2 + $0x24] sm:$0xf0]  ;;  %v1482_v41 = vld [vmem:[#allocation2 + $0x28] sm:$0xf0] }
  0xd8   : > { %682 = vst [vmem:[#allocation2 + $0x30] sm:$0xff] %v650_v37  ;;  %v1481_v42 = vor.u32 %v1692_v39, %v1480_v38  ;;  %v1485_v43 = vor.u32 %v1691_v40, %v1482_v41  ;;  %v1678_v38 = vld [vmem:[%s1989_s10 + $0x78] sm:$0xff] }
  0xda   : > { %1050 = vmatmul.bf16.gmra.mxu2 %v1481_v42  ;;  %1139 = vmatmul.bf16.gmra.mxu3 %v1485_v43  ;;  %v492_v44 = vpop.f32.mrf.mxu0 }
  0xdb   : > { %v493_v45 = vadd.f32 %v492_v44, %v2066_v49  ;;  %v581_v46 = vpop.f32.mrf.mxu1 }
  0xdc   : > { %v582_v47 = vadd.f32 %v581_v46, %v2068_v50 }
  0xde   : > { %v651_v48 = vpack.c.bf16 %v582_v47, %v493_v45 }
  0xdf   : > { %v1488_v57 = vld [vmem:[#allocation2 + $0x30] sm:$0xf]  ;;  %v1693_v59 = vld [vmem:[#allocation2 + $0x34] sm:$0xf] }
  0xe0   : > { %683 = vst [vmem:[#allocation2 + $0x38] sm:$0xff] %v651_v48 }
  0xe2   : > { %v495_v52 = vpop.f32.mrf.mxu0 }
  0xe3   : > { %v496_v53 = vadd.f32 %v495_v52, %v2066_v49  ;;  %v584_v54 = vpop.f32.mrf.mxu1 }
  0xe4   : > { %v585_v55 = vadd.f32 %v584_v54, %v2068_v50 }
  0xe5   : > { %1442 = vmatmul.msk.bf16.gmra.mxu0 %vm417_vm0, %v1675_v51 }
  0xe6   : > { %v652_v56 = vpack.c.bf16 %v585_v55, %v496_v53  ;;  %1458 = vmatmul.msk.bf16.gmra.mxu1 %vm417_vm0, %v1675_v51 }
  0xe7   : > { %v1694_v58 = vld [vmem:[#allocation2 + $0x34] sm:$0xf0]  ;;  %v1490_v60 = vld [vmem:[#allocation2 + $0x38] sm:$0xf0] }
  0xe8   : > { %684 = vst [vmem:[#allocation2 + $0x40] sm:$0xff] %v652_v56  ;;  %v1489_v61 = vor.u32 %v1694_v58, %v1488_v57  ;;  %v1493_v62 = vor.u32 %v1693_v59, %v1490_v60 }
  0xea   : > { %1055 = vmatmul.bf16.gmra.mxu2 %v1489_v61  ;;  %1144 = vmatmul.bf16.gmra.mxu3 %v1493_v62  ;;  %v497_v63 = vpop.f32.mrf.mxu0 }
  0xeb   : > { %v498_v0 = vadd.f32 %v497_v63, %v2066_v49  ;;  %v586_v1 = vpop.f32.mrf.mxu1 }
  0xec   : > { %v587_v2 = vadd.f32 %v586_v1, %v2068_v50 }
  0xee   : > { %v653_v3 = vpack.c.bf16 %v587_v2, %v498_v0 }
  0xef   : > { %v1496_v10 = vld [vmem:[#allocation2 + $0x40] sm:$0xf]  ;;  %v1695_v12 = vld [vmem:[#allocation2 + $0x44] sm:$0xf] }
  0xf0   : > { %685 = vst [vmem:[#allocation2 + $0x48] sm:$0xff] %v653_v3 }
  0xf2   : > { %v500_v5 = vpop.f32.mrf.mxu0 }
  0xf3   : > { %v501_v6 = vadd.f32 %v500_v5, %v2066_v49  ;;  %v589_v7 = vpop.f32.mrf.mxu1 }
  0xf4   : > { %v590_v8 = vadd.f32 %v589_v7, %v2068_v50 }
  0xf5   : > { %1443 = vmatmul.msk.bf16.gmra.mxu0 %vm417_vm0, %v1676_v4 }
  0xf6   : > { %v654_v9 = vpack.c.bf16 %v590_v8, %v501_v6  ;;  %1459 = vmatmul.msk.bf16.gmra.mxu1 %vm417_vm0, %v1676_v4 }
  0xf7   : > { %v1696_v11 = vld [vmem:[#allocation2 + $0x44] sm:$0xf0]  ;;  %v1498_v13 = vld [vmem:[#allocation2 + $0x48] sm:$0xf0] }
  0xf8   : > { %686 = vst [vmem:[#allocation2 + $0x50] sm:$0xff] %v654_v9  ;;  %v1497_v14 = vor.u32 %v1696_v11, %v1496_v10  ;;  %v1501_v15 = vor.u32 %v1695_v12, %v1498_v13 }
  0xfa   : > { %1060 = vmatmul.bf16.gmra.mxu2 %v1497_v14  ;;  %1149 = vmatmul.bf16.gmra.mxu3 %v1501_v15  ;;  %v502_v16 = vpop.f32.mrf.mxu0 }
  0xfb   : > { %v503_v17 = vadd.f32 %v502_v16, %v2066_v49  ;;  %v591_v18 = vpop.f32.mrf.mxu1 }
  0xfc   : > { %v592_v19 = vadd.f32 %v591_v18, %v2068_v50 }
  0xfe   : > { %v655_v20 = vpack.c.bf16 %v592_v19, %v503_v17 }
  0xff   : > { %v1504_v27 = vld [vmem:[#allocation2 + $0x50] sm:$0xf]  ;;  %v1697_v29 = vld [vmem:[#allocation2 + $0x54] sm:$0xf] }
 0x100   : > { %687 = vst [vmem:[#allocation2 + $0x58] sm:$0xff] %v655_v20 }
 0x102   : > { %v505_v22 = vpop.f32.mrf.mxu0 }
 0x103   : > { %v506_v23 = vadd.f32 %v505_v22, %v2066_v49  ;;  %v594_v24 = vpop.f32.mrf.mxu1 }
 0x104   : > { %v595_v25 = vadd.f32 %v594_v24, %v2068_v50 }
 0x105   : > { %1444 = vmatmul.msk.bf16.gmra.mxu0 %vm417_vm0, %v1677_v21 }
 0x106   : > { %v656_v26 = vpack.c.bf16 %v595_v25, %v506_v23  ;;  %1460 = vmatmul.msk.bf16.gmra.mxu1 %vm417_vm0, %v1677_v21  ;;  %v2136_v21 = vld [vmem:[%s2299_s4] ss:$0 sm:$0xff] }
 0x107   : > { %v1698_v28 = vld [vmem:[#allocation2 + $0x54] sm:$0xf0]  ;;  %v1506_v30 = vld [vmem:[#allocation2 + $0x58] sm:$0xf0] }
 0x108   : > { %688 = vst [vmem:[#allocation2 + $0x60] sm:$0xff] %v656_v26  ;;  %v1505_v31 = vor.u32 %v1698_v28, %v1504_v27  ;;  %v1509_v32 = vor.u32 %v1697_v29, %v1506_v30 }
 0x10a   : > { %1065 = vmatmul.bf16.gmra.mxu2 %v1505_v31  ;;  %1154 = vmatmul.bf16.gmra.mxu3 %v1509_v32  ;;  %v507_v33 = vpop.f32.mrf.mxu0 }
 0x10b   : > { %v508_v34 = vadd.f32 %v507_v33, %v2066_v49  ;;  %v596_v35 = vpop.f32.mrf.mxu1 }
 0x10c   : > { %v597_v36 = vadd.f32 %v596_v35, %v2068_v50 }
 0x10e   : > { %v657_v37 = vpack.c.bf16 %v597_v36, %v508_v34 }
 0x10f   : > { %v1512_v44 = vld [vmem:[#allocation2 + $0x60] sm:$0xf]  ;;  %v1699_v46 = vld [vmem:[#allocation2 + $0x64] sm:$0xf] }
 0x110   : > { %689 = vst [vmem:[#allocation2 + $0x68] sm:$0xff] %v657_v37 }
 0x112   : > { %v510_v39 = vpop.f32.mrf.mxu0 }
 0x113   : > { %v511_v40 = vadd.f32 %v510_v39, %v2066_v49  ;;  %v599_v41 = vpop.f32.mrf.mxu1 }
 0x114   : > { %v600_v42 = vadd.f32 %v599_v41, %v2068_v50 }
 0x115   : > { %1445 = vmatmul.msk.bf16.gmra.mxu0 %vm417_vm0, %v1678_v38 }
 0x116   : > { %v658_v43 = vpack.c.bf16 %v600_v42, %v511_v40  ;;  %1461 = vmatmul.msk.bf16.gmra.mxu1 %vm417_vm0, %v1678_v38 }
 0x117   : > { %v1700_v45 = vld [vmem:[#allocation2 + $0x64] sm:$0xf0]  ;;  %v1514_v47 = vld [vmem:[#allocation2 + $0x68] sm:$0xf0] }
 0x118   : > { %690 = vst [vmem:[#allocation2 + $0x70] sm:$0xff] %v658_v43  ;;  %v1513_v48 = vor.u32 %v1700_v45, %v1512_v44  ;;  %v1517_v51 = vor.u32 %v1699_v46, %v1514_v47 }
 0x11a   : > { %1070 = vmatmul.bf16.gmra.mxu2 %v1513_v48  ;;  %1159 = vmatmul.bf16.gmra.mxu3 %v1517_v51  ;;  %v512_v52 = vpop.f32.mrf.mxu0 }
 0x11b   : > { %v513_v53 = vadd.f32 %v512_v52, %v2066_v49  ;;  %v601_v54 = vpop.f32.mrf.mxu1 }
 0x11c   : > { %v602_v55 = vadd.f32 %v601_v54, %v2068_v50 }
 0x11e   : > { %v659_v56 = vpack.c.bf16 %v602_v55, %v513_v53 }
 0x11f   : > { %v1520_v62 = vld [vmem:[#allocation2 + $0x70] sm:$0xf]  ;;  %v1701_v0 = vld [vmem:[#allocation2 + $0x74] sm:$0xf] }
 0x120   : > { %691 = vst [vmem:[#allocation2 + $0x78] sm:$0xff] %v659_v56 }
 0x122   : > { %v515_v57 = vpop.f32.mrf.mxu0 }
 0x123   : > { %v516_v58 = vadd.f32 %v515_v57, %v2066_v49  ;;  %v604_v59 = vpop.f32.mrf.mxu1 }
 0x124   : > { %v605_v60 = vadd.f32 %v604_v59, %v2068_v50 }
 0x126   : > { %v660_v61 = vpack.c.bf16 %v605_v60, %v516_v58 }
 0x127   : > { %v1702_v63 = vld [vmem:[#allocation2 + $0x74] sm:$0xf0]  ;;  %v1522_v1 = vld [vmem:[#allocation2 + $0x78] sm:$0xf0] }
 0x128   : > { %692 = vst [vmem:[#allocation2 + $0x80] sm:$0xff] %v660_v61  ;;  %v1521_v2 = vor.u32 %v1702_v63, %v1520_v62  ;;  %v1525_v3 = vor.u32 %v1701_v0, %v1522_v1 }
 0x12a   : > { %1075 = vmatmul.bf16.gmra.mxu2 %v1521_v2  ;;  %1164 = vmatmul.bf16.gmra.mxu3 %v1525_v3  ;;  %v517_v4 = vpop.f32.mrf.mxu0 }
 0x12b   : > { %v518_v5 = vadd.f32 %v517_v4, %v2066_v49  ;;  %v606_v6 = vpop.f32.mrf.mxu1 }
 0x12c   : > { %v607_v7 = vadd.f32 %v606_v6, %v2068_v50 }
 0x12e   : > { %v661_v8 = vpack.c.bf16 %v607_v7, %v518_v5 }
 0x12f   : > { %v1528_v14 = vld [vmem:[#allocation2 + $0x80] sm:$0xf]  ;;  %v1703_v16 = vld [vmem:[#allocation2 + $0x84] sm:$0xf] }
 0x130   : > { %693 = vst [vmem:[#allocation2 + $0x88] sm:$0xff] %v661_v8 }
 0x132   : > { %v520_v9 = vpop.f32.mrf.mxu0 }
 0x133   : > { %v521_v10 = vadd.f32 %v520_v9, %v2066_v49  ;;  %v609_v11 = vpop.f32.mrf.mxu1 }
 0x134   : > { %v610_v12 = vadd.f32 %v609_v11, %v2068_v50 }
 0x136   : > { %v662_v13 = vpack.c.bf16 %v610_v12, %v521_v10 }
 0x137   : > { %v1704_v15 = vld [vmem:[#allocation2 + $0x84] sm:$0xf0]  ;;  %v1530_v17 = vld [vmem:[#allocation2 + $0x88] sm:$0xf0] }
 0x138   : > { %694 = vst [vmem:[#allocation2 + $0x90] sm:$0xff] %v662_v13  ;;  %v1529_v18 = vor.u32 %v1704_v15, %v1528_v14  ;;  %v1533_v19 = vor.u32 %v1703_v16, %v1530_v17 }
 0x13a   : > { %1080 = vmatmul.bf16.gmra.mxu2 %v1529_v18  ;;  %1169 = vmatmul.bf16.gmra.mxu3 %v1533_v19  ;;  %v522_v20 = vpop.f32.mrf.mxu0 }
 0x13b   : > { %v523_v22 = vadd.f32 %v522_v20, %v2066_v49  ;;  %v611_v23 = vpop.f32.mrf.mxu1 }
 0x13c   : > { %v612_v24 = vadd.f32 %v611_v23, %v2068_v50 }
 0x13d   : > { %v1041_v25 = vpop.f32.mrf.mxu2  ;;  %v1130_v26 = vpop.f32.mrf.mxu3 }
 0x13e   : > { %v663_v27 = vpack.c.bf16 %v612_v24, %v523_v22  ;;  %v1042_v28 = vadd.f32 %v2136_v21, %v1041_v25 }
 0x13f   : > { %v1536_v38 = vld [vmem:[#allocation2 + $0x90] sm:$0xf]  ;;  %v1705_v40 = vld [vmem:[#allocation2 + $0x94] sm:$0xf] }
 0x140   : > { %695 = vst [vmem:[#allocation2 + $0x98] sm:$0xff] %v663_v27  ;;  %v1131_v29 = vadd.f32 %v1130_v26, %v1042_v28 }
 0x142   : > { %1210 = vst [vmem:[%s2143_s30] sm:$0xff] %v1131_v29  ;;  %v525_v30 = vpop.f32.mrf.mxu0 }
 0x143   : > { %v526_v31 = vadd.f32 %v525_v30, %v2066_v49  ;;  %v614_v32 = vpop.f32.mrf.mxu1 }
 0x144   : > { %v615_v33 = vadd.f32 %v614_v32, %v2068_v50 }
 0x145   : > { %v1043_v34 = vpop.f32.mrf.mxu2  ;;  %v1132_v35 = vpop.f32.mrf.mxu3 }
 0x146   : > { %v664_v36 = vpack.c.bf16 %v615_v33, %v526_v31  ;;  %v1044_v37 = vadd.f32 %v2136_v21, %v1043_v34 }
 0x147   : > { %v1706_v39 = vld [vmem:[#allocation2 + $0x94] sm:$0xf0]  ;;  %v1538_v41 = vld [vmem:[#allocation2 + $0x98] sm:$0xf0] }
 0x148   : > { %696 = vst [vmem:[#allocation2 + $0xa0] sm:$0xff] %v664_v36  ;;  %v1133_v42 = vadd.f32 %v1132_v35, %v1044_v37  ;;  %v1537_v43 = vor.u32 %v1706_v39, %v1536_v38  ;;  %v1541_v44 = vor.u32 %v1705_v40, %v1538_v41 }
 0x14a   : > { %1211 = vst [vmem:[%s2143_s30 + $0x8] sm:$0xff] %v1133_v42  ;;  %1085 = vmatmul.bf16.gmra.mxu2 %v1537_v43  ;;  %1174 = vmatmul.bf16.gmra.mxu3 %v1541_v44  ;;  %v527_v45 = vpop.f32.mrf.mxu0 }
 0x14b   : > { %v528_v46 = vadd.f32 %v527_v45, %v2066_v49  ;;  %v616_v47 = vpop.f32.mrf.mxu1 }
 0x14c   : > { %v617_v48 = vadd.f32 %v616_v47, %v2068_v50 }
 0x14d   : > { %v1046_v51 = vpop.f32.mrf.mxu2  ;;  %v1135_v52 = vpop.f32.mrf.mxu3 }
 0x14e   : > { %v665_v53 = vpack.c.bf16 %v617_v48, %v528_v46  ;;  %v1047_v54 = vadd.f32 %v2136_v21, %v1046_v51 }
 0x14f   : > { %v1544_v0 = vld [vmem:[#allocation2 + $0xa0] sm:$0xf]  ;;  %v1707_v2 = vld [vmem:[#allocation2 + $0xa4] sm:$0xf] }
 0x150   : > { %697 = vst [vmem:[#allocation2 + $0xa8] sm:$0xff] %v665_v53  ;;  %v1136_v55 = vadd.f32 %v1135_v52, %v1047_v54 }
 0x152   : > { %1212 = vst [vmem:[%s2143_s30 + $0x10] sm:$0xff] %v1136_v55  ;;  %v530_v56 = vpop.f32.mrf.mxu0 }
 0x153   : > { %v531_v57 = vadd.f32 %v530_v56, %v2066_v49  ;;  %v619_v58 = vpop.f32.mrf.mxu1 }
 0x154   : > { %v620_v59 = vadd.f32 %v619_v58, %v2068_v50 }
 0x155   : > { %v1048_v60 = vpop.f32.mrf.mxu2  ;;  %v1137_v61 = vpop.f32.mrf.mxu3 }
 0x156   : > { %v666_v62 = vpack.c.bf16 %v620_v59, %v531_v57  ;;  %v1049_v63 = vadd.f32 %v2136_v21, %v1048_v60 }
 0x157   : > { %v1708_v1 = vld [vmem:[#allocation2 + $0xa4] sm:$0xf0]  ;;  %v1546_v3 = vld [vmem:[#allocation2 + $0xa8] sm:$0xf0] }
 0x158   : > { %698 = vst [vmem:[#allocation2 + $0xb0] sm:$0xff] %v666_v62  ;;  %v1138_v4 = vadd.f32 %v1137_v61, %v1049_v63  ;;  %v1545_v5 = vor.u32 %v1708_v1, %v1544_v0  ;;  %v1549_v6 = vor.u32 %v1707_v2, %v1546_v3 }
 0x15a   : > { %1213 = vst [vmem:[%s2143_s30 + $0x18] sm:$0xff] %v1138_v4  ;;  %1090 = vmatmul.bf16.gmra.mxu2 %v1545_v5  ;;  %1179 = vmatmul.bf16.gmra.mxu3 %v1549_v6  ;;  %v532_v7 = vpop.f32.mrf.mxu0 }
 0x15b   : > { %v533_v8 = vadd.f32 %v532_v7, %v2066_v49  ;;  %v621_v9 = vpop.f32.mrf.mxu1 }
 0x15c   : > { %v622_v10 = vadd.f32 %v621_v9, %v2068_v50 }
 0x15d   : > { %v1051_v11 = vpop.f32.mrf.mxu2  ;;  %v1140_v12 = vpop.f32.mrf.mxu3 }
 0x15e   : > { %v667_v13 = vpack.c.bf16 %v622_v10, %v533_v8  ;;  %v1052_v14 = vadd.f32 %v2136_v21, %v1051_v11 }
 0x15f   : > { %v1552_v25 = vld [vmem:[#allocation2 + $0xb0] sm:$0xf]  ;;  %v1709_v27 = vld [vmem:[#allocation2 + $0xb4] sm:$0xf] }
 0x160   : > { %699 = vst [vmem:[#allocation2 + $0xb8] sm:$0xff] %v667_v13  ;;  %v1141_v15 = vadd.f32 %v1140_v12, %v1052_v14 }
 0x162   : > { %1214 = vst [vmem:[%s2143_s30 + $0x20] sm:$0xff] %v1141_v15  ;;  %v535_v16 = vpop.f32.mrf.mxu0 }
 0x163   : > { %v536_v17 = vadd.f32 %v535_v16, %v2066_v49  ;;  %v624_v18 = vpop.f32.mrf.mxu1 }
 0x164   : > { %v625_v19 = vadd.f32 %v624_v18, %v2068_v50 }
 0x165   : > { %v1053_v20 = vpop.f32.mrf.mxu2  ;;  %v1142_v22 = vpop.f32.mrf.mxu3 }
 0x166   : > { %v668_v23 = vpack.c.bf16 %v625_v19, %v536_v17  ;;  %v1054_v24 = vadd.f32 %v2136_v21, %v1053_v20 }
 0x167   : > { %v1710_v26 = vld [vmem:[#allocation2 + $0xb4] sm:$0xf0]  ;;  %v1554_v28 = vld [vmem:[#allocation2 + $0xb8] sm:$0xf0] }
 0x168   : > { %700 = vst [vmem:[#allocation2 + $0xc0] sm:$0xff] %v668_v23  ;;  %v1143_v29 = vadd.f32 %v1142_v22, %v1054_v24  ;;  %v1553_v30 = vor.u32 %v1710_v26, %v1552_v25  ;;  %v1557_v31 = vor.u32 %v1709_v27, %v1554_v28 }
 0x16a   : > { %1215 = vst [vmem:[%s2143_s30 + $0x28] sm:$0xff] %v1143_v29  ;;  %1095 = vmatmul.bf16.gmra.mxu2 %v1553_v30  ;;  %1184 = vmatmul.bf16.gmra.mxu3 %v1557_v31  ;;  %v537_v32 = vpop.f32.mrf.mxu0 }
 0x16b   : > { %v538_v33 = vadd.f32 %v537_v32, %v2066_v49  ;;  %v626_v34 = vpop.f32.mrf.mxu1 }
 0x16c   : > { %v627_v35 = vadd.f32 %v626_v34, %v2068_v50 }
 0x16d   : > { %v1056_v36 = vpop.f32.mrf.mxu2  ;;  %v1145_v37 = vpop.f32.mrf.mxu3 }
 0x16e   : > { %v669_v38 = vpack.c.bf16 %v627_v35, %v538_v33  ;;  %v1057_v39 = vadd.f32 %v2136_v21, %v1056_v36 }
 0x16f   : > { %v1560_v51 = vld [vmem:[#allocation2 + $0xc0] sm:$0xf]  ;;  %v1711_v53 = vld [vmem:[#allocation2 + $0xc4] sm:$0xf] }
 0x170   : > { %701 = vst [vmem:[#allocation2 + $0xc8] sm:$0xff] %v669_v38  ;;  %v1146_v40 = vadd.f32 %v1145_v37, %v1057_v39 }
 0x172   : > { %1216 = vst [vmem:[%s2143_s30 + $0x30] sm:$0xff] %v1146_v40  ;;  %v540_v41 = vpop.f32.mrf.mxu0 }
 0x173   : > { %v541_v42 = vadd.f32 %v540_v41, %v2066_v49  ;;  %v629_v43 = vpop.f32.mrf.mxu1 }
 0x174   : > { %v630_v44 = vadd.f32 %v629_v43, %v2068_v50 }
 0x175   : > { %v1058_v45 = vpop.f32.mrf.mxu2  ;;  %v1147_v46 = vpop.f32.mrf.mxu3 }
 0x176   : > { %v670_v47 = vpack.c.bf16 %v630_v44, %v541_v42  ;;  %v1059_v48 = vadd.f32 %v2136_v21, %v1058_v45 }
 0x177   : > { %v1712_v52 = vld [vmem:[#allocation2 + $0xc4] sm:$0xf0]  ;;  %v1562_v54 = vld [vmem:[#allocation2 + $0xc8] sm:$0xf0] }
 0x178   : > { %702 = vst [vmem:[#allocation2 + $0xd0] sm:$0xff] %v670_v47  ;;  %v1148_v55 = vadd.f32 %v1147_v46, %v1059_v48  ;;  %v1561_v56 = vor.u32 %v1712_v52, %v1560_v51  ;;  %v1565_v57 = vor.u32 %v1711_v53, %v1562_v54 }
 0x17a   : > { %1217 = vst [vmem:[%s2143_s30 + $0x38] sm:$0xff] %v1148_v55  ;;  %1100 = vmatmul.bf16.gmra.mxu2 %v1561_v56  ;;  %1189 = vmatmul.bf16.gmra.mxu3 %v1565_v57  ;;  %v542_v58 = vpop.f32.mrf.mxu0 }
 0x17b   : > { %v543_v59 = vadd.f32 %v542_v58, %v2066_v49  ;;  %v631_v60 = vpop.f32.mrf.mxu1 }
 0x17c   : > { %v632_v61 = vadd.f32 %v631_v60, %v2068_v50 }
 0x17d   : > { %v1061_v62 = vpop.f32.mrf.mxu2  ;;  %v1150_v63 = vpop.f32.mrf.mxu3 }
 0x17e   : > { %v671_v0 = vpack.c.bf16 %v632_v61, %v543_v59  ;;  %v1062_v1 = vadd.f32 %v2136_v21, %v1061_v62 }
 0x17f   : > { %v1568_v11 = vld [vmem:[#allocation2 + $0xd0] sm:$0xf]  ;;  %v1713_v13 = vld [vmem:[#allocation2 + $0xd4] sm:$0xf] }
 0x180   : > { %703 = vst [vmem:[#allocation2 + $0xd8] sm:$0xff] %v671_v0  ;;  %v1151_v2 = vadd.f32 %v1150_v63, %v1062_v1 }
 0x182   : > { %1218 = vst [vmem:[%s2143_s30 + $0x40] sm:$0xff] %v1151_v2  ;;  %v545_v3 = vpop.f32.mrf.mxu0 }
 0x183   : > { %v546_v4 = vadd.f32 %v545_v3, %v2066_v49  ;;  %v634_v5 = vpop.f32.mrf.mxu1 }
 0x184   : > { %v635_v6 = vadd.f32 %v634_v5, %v2068_v50 }
 0x185   : > { %v1063_v7 = vpop.f32.mrf.mxu2  ;;  %v1152_v8 = vpop.f32.mrf.mxu3 }
 0x186   : > { %v672_v9 = vpack.c.bf16 %v635_v6, %v546_v4  ;;  %v1064_v10 = vadd.f32 %v2136_v21, %v1063_v7 }
 0x187   : > { %v1714_v12 = vld [vmem:[#allocation2 + $0xd4] sm:$0xf0]  ;;  %v1570_v14 = vld [vmem:[#allocation2 + $0xd8] sm:$0xf0] }
 0x188   : > { %704 = vst [vmem:[#allocation2 + $0xe0] sm:$0xff] %v672_v9  ;;  %v1153_v15 = vadd.f32 %v1152_v8, %v1064_v10  ;;  %v1569_v16 = vor.u32 %v1714_v12, %v1568_v11  ;;  %v1573_v17 = vor.u32 %v1713_v13, %v1570_v14 }
 0x18a   : > { %1219 = vst [vmem:[%s2143_s30 + $0x48] sm:$0xff] %v1153_v15  ;;  %1105 = vmatmul.bf16.gmra.mxu2 %v1569_v16  ;;  %1194 = vmatmul.bf16.gmra.mxu3 %v1573_v17  ;;  %v547_v18 = vpop.f32.mrf.mxu0 }
 0x18b   : > { %v548_v19 = vadd.f32 %v547_v18, %v2066_v49  ;;  %v636_v20 = vpop.f32.mrf.mxu1 }
 0x18c   : > { %v637_v22 = vadd.f32 %v636_v20, %v2068_v50 }
 0x18d   : > { %v1066_v23 = vpop.f32.mrf.mxu2  ;;  %v1155_v24 = vpop.f32.mrf.mxu3 }
 0x18e   : > { %v673_v25 = vpack.c.bf16 %v637_v22, %v548_v19  ;;  %v1067_v26 = vadd.f32 %v2136_v21, %v1066_v23 }
 0x18f   : > { %v1576_v36 = vld [vmem:[#allocation2 + $0xe0] sm:$0xf]  ;;  %v1715_v38 = vld [vmem:[#allocation2 + $0xe4] sm:$0xf] }
 0x190   : > { %705 = vst [vmem:[#allocation2 + $0xe8] sm:$0xff] %v673_v25  ;;  %v1156_v27 = vadd.f32 %v1155_v24, %v1067_v26 }
 0x192   : > { %1220 = vst [vmem:[%s2143_s30 + $0x50] sm:$0xff] %v1156_v27  ;;  %v550_v28 = vpop.f32.mrf.mxu0 }
 0x193   : > { %v551_v29 = vadd.f32 %v550_v28, %v2066_v49  ;;  %v639_v30 = vpop.f32.mrf.mxu1 }
 0x194   : > { %v640_v31 = vadd.f32 %v639_v30, %v2068_v50 }
 0x195   : > { %v1068_v32 = vpop.f32.mrf.mxu2  ;;  %v1157_v33 = vpop.f32.mrf.mxu3 }
 0x196   : > { %v674_v34 = vpack.c.bf16 %v640_v31, %v551_v29  ;;  %v1069_v35 = vadd.f32 %v2136_v21, %v1068_v32 }
 0x197   : > { %v1716_v37 = vld [vmem:[#allocation2 + $0xe4] sm:$0xf0]  ;;  %v1578_v39 = vld [vmem:[#allocation2 + $0xe8] sm:$0xf0] }
 0x198   : > { %706 = vst [vmem:[#allocation2 + $0xf0] sm:$0xff] %v674_v34  ;;  %v1158_v40 = vadd.f32 %v1157_v33, %v1069_v35  ;;  %v1577_v41 = vor.u32 %v1716_v37, %v1576_v36  ;;  %v1581_v42 = vor.u32 %v1715_v38, %v1578_v39 }
 0x19a   : > { %1221 = vst [vmem:[%s2143_s30 + $0x58] sm:$0xff] %v1158_v40  ;;  %1110 = vmatmul.bf16.gmra.mxu2 %v1577_v41  ;;  %1199 = vmatmul.bf16.gmra.mxu3 %v1581_v42  ;;  %v552_v43 = vpop.f32.mrf.mxu0 }
 0x19b   : > { %v553_v44 = vadd.f32 %v552_v43, %v2066_v49  ;;  %v641_v45 = vpop.f32.mrf.mxu1 }
 0x19c   : > { %v642_v46 = vadd.f32 %v641_v45, %v2068_v50 }
 0x19d   : > { %v1071_v47 = vpop.f32.mrf.mxu2  ;;  %v1160_v48 = vpop.f32.mrf.mxu3 }
 0x19e   : > { %v675_v51 = vpack.c.bf16 %v642_v46, %v553_v44  ;;  %v1072_v52 = vadd.f32 %v2136_v21, %v1071_v47 }
 0x19f   : > { %v1584_v57 = vld [vmem:[#allocation2 + $0xf0] sm:$0xf]  ;;  %v1717_v49 = vld [vmem:[#allocation2 + $0xf4] sm:$0xf] }
 0x1a0   : > { %707 = vst [vmem:[#allocation2 + $0xf8] sm:$0xff] %v675_v51  ;;  %v1161_v53 = vadd.f32 %v1160_v48, %v1072_v52 }
 0x1a2   : > { %1222 = vst [vmem:[%s2143_s30 + $0x60] sm:$0xff] %v1161_v53 }
 0x1a5   : > { %v1073_v54 = vpop.f32.mrf.mxu2  ;;  %v1162_v55 = vpop.f32.mrf.mxu3 }
 0x1a6   : > { %v1074_v56 = vadd.f32 %v2136_v21, %v1073_v54 }
 0x1a7   : > { %v1718_v58 = vld [vmem:[#allocation2 + $0xf4] sm:$0xf0]  ;;  %v1586_v59 = vld [vmem:[#allocation2 + $0xf8] sm:$0xf0] }
 0x1a8   : > { %v1163_v50 = vadd.f32 %v1162_v55, %v1074_v56  ;;  %v1585_v60 = vor.u32 %v1718_v58, %v1584_v57  ;;  %v1589_v61 = vor.u32 %v1717_v49, %v1586_v59 }
 0x1aa   : > { %1223 = vst [vmem:[%s2143_s30 + $0x68] sm:$0xff] %v1163_v50  ;;  %1115 = vmatmul.bf16.gmra.mxu2 %v1585_v60  ;;  %1204 = vmatmul.bf16.gmra.mxu3 %v1589_v61 }
 0x1ad   : > { %v1076_v62 = vpop.f32.mrf.mxu2  ;;  %v1165_v63 = vpop.f32.mrf.mxu3 }
 0x1ae   : > { %v1077_v0 = vadd.f32 %v2136_v21, %v1076_v62 }
 0x1b0   : > { %v1166_v1 = vadd.f32 %v1165_v63, %v1077_v0 }
 0x1b2   : > { %1224 = vst [vmem:[%s2143_s30 + $0x70] sm:$0xff] %v1166_v1 }
 0x1b5   : > { %v1078_v2 = vpop.f32.mrf.mxu2  ;;  %v1167_v3 = vpop.f32.mrf.mxu3 }
 0x1b6   : > { %v1079_v4 = vadd.f32 %v2136_v21, %v1078_v2 }
 0x1b8   : > { %v1168_v5 = vadd.f32 %v1167_v3, %v1079_v4 }
 0x1ba   : > { %1225 = vst [vmem:[%s2143_s30 + $0x78] sm:$0xff] %v1168_v5 }
 0x1bd   : > { %v1081_v6 = vpop.f32.mrf.mxu2  ;;  %v1170_v7 = vpop.f32.mrf.mxu3 }
 0x1be   : > { %v1082_v8 = vadd.f32 %v2136_v21, %v1081_v6 }
 0x1c0   : > { %v1171_v9 = vadd.f32 %v1170_v7, %v1082_v8 }
 0x1c2   : > { %1226 = vst [vmem:[%s2143_s30 + $0x80] sm:$0xff] %v1171_v9 }
 0x1c5   : > { %v1083_v10 = vpop.f32.mrf.mxu2  ;;  %v1172_v11 = vpop.f32.mrf.mxu3 }
 0x1c6   : > { %v1084_v12 = vadd.f32 %v2136_v21, %v1083_v10 }
 0x1c8   : > { %v1173_v13 = vadd.f32 %v1172_v11, %v1084_v12 }
 0x1ca   : > { %1227 = vst [vmem:[%s2143_s30 + $0x88] sm:$0xff] %v1173_v13 }
 0x1cd   : > { %v1086_v14 = vpop.f32.mrf.mxu2  ;;  %v1175_v15 = vpop.f32.mrf.mxu3 }
 0x1ce   : > { %v1087_v16 = vadd.f32 %v2136_v21, %v1086_v14 }
 0x1d0   : > { %v1176_v17 = vadd.f32 %v1175_v15, %v1087_v16 }
 0x1d2   : > { %1228 = vst [vmem:[%s2143_s30 + $0x90] sm:$0xff] %v1176_v17 }
 0x1d5   : > { %v1088_v18 = vpop.f32.mrf.mxu2  ;;  %v1177_v19 = vpop.f32.mrf.mxu3 }
 0x1d6   : > { %v1089_v20 = vadd.f32 %v2136_v21, %v1088_v18 }
 0x1d8   : > { %v1178_v22 = vadd.f32 %v1177_v19, %v1089_v20 }
 0x1da   : > { %1229 = vst [vmem:[%s2143_s30 + $0x98] sm:$0xff] %v1178_v22 }
 0x1dd   : > { %v1091_v23 = vpop.f32.mrf.mxu2  ;;  %v1180_v24 = vpop.f32.mrf.mxu3 }
 0x1de   : > { %v1092_v25 = vadd.f32 %v2136_v21, %v1091_v23 }
 0x1e0   : > { %v1181_v26 = vadd.f32 %v1180_v24, %v1092_v25 }
 0x1e2   : > { %1230 = vst [vmem:[%s2143_s30 + $0xa0] sm:$0xff] %v1181_v26 }
 0x1e5   : > { %v1093_v27 = vpop.f32.mrf.mxu2  ;;  %v1182_v28 = vpop.f32.mrf.mxu3 }
 0x1e6   : > { %v1094_v29 = vadd.f32 %v2136_v21, %v1093_v27 }
 0x1e8   : > { %v1183_v30 = vadd.f32 %v1182_v28, %v1094_v29 }
 0x1ea   : > { %1231 = vst [vmem:[%s2143_s30 + $0xa8] sm:$0xff] %v1183_v30 }
 0x1ed   : > { %v1096_v31 = vpop.f32.mrf.mxu2  ;;  %v1185_v32 = vpop.f32.mrf.mxu3 }
 0x1ee   : > { %v1097_v33 = vadd.f32 %v2136_v21, %v1096_v31 }
 0x1f0   : > { %v1186_v34 = vadd.f32 %v1185_v32, %v1097_v33 }
 0x1f2   : > { %1232 = vst [vmem:[%s2143_s30 + $0xb0] sm:$0xff] %v1186_v34 }
 0x1f5   : > { %v1098_v35 = vpop.f32.mrf.mxu2  ;;  %v1187_v36 = vpop.f32.mrf.mxu3 }
 0x1f6   : > { %v1099_v37 = vadd.f32 %v2136_v21, %v1098_v35 }
 0x1f8   : > { %v1188_v38 = vadd.f32 %v1187_v36, %v1099_v37 }
 0x1fa   : > { %1233 = vst [vmem:[%s2143_s30 + $0xb8] sm:$0xff] %v1188_v38 }
 0x1fd   : > { %v1101_v39 = vpop.f32.mrf.mxu2  ;;  %v1190_v40 = vpop.f32.mrf.mxu3 }
 0x1fe   : > { %v1102_v41 = vadd.f32 %v2136_v21, %v1101_v39 }
 0x200   : > { %v1191_v42 = vadd.f32 %v1190_v40, %v1102_v41 }
 0x202   : > { %1234 = vst [vmem:[%s2143_s30 + $0xc0] sm:$0xff] %v1191_v42 }
 0x205   : > { %v1103_v43 = vpop.f32.mrf.mxu2  ;;  %v1192_v44 = vpop.f32.mrf.mxu3 }
 0x206   : > { %v1104_v45 = vadd.f32 %v2136_v21, %v1103_v43 }
 0x208   : > { %v1193_v46 = vadd.f32 %v1192_v44, %v1104_v45 }
 0x20a   : > { %1235 = vst [vmem:[%s2143_s30 + $0xc8] sm:$0xff] %v1193_v46 }
 0x20d   : > { %v1106_v47 = vpop.f32.mrf.mxu2  ;;  %v1195_v48 = vpop.f32.mrf.mxu3 }
 0x20e   : > { %v1107_v51 = vadd.f32 %v2136_v21, %v1106_v47 }
 0x210   : > { %v1196_v52 = vadd.f32 %v1195_v48, %v1107_v51 }
 0x212   : > { %1236 = vst [vmem:[%s2143_s30 + $0xd0] sm:$0xff] %v1196_v52 }
 0x215   : > { %v1108_v53 = vpop.f32.mrf.mxu2  ;;  %v1197_v54 = vpop.f32.mrf.mxu3 }
 0x216   : > { %v1109_v55 = vadd.f32 %v2136_v21, %v1108_v53 }
 0x218   : > { %v1198_v56 = vadd.f32 %v1197_v54, %v1109_v55 }
 0x21a   : > { %1237 = vst [vmem:[%s2143_s30 + $0xd8] sm:$0xff] %v1198_v56 }
 0x21d   : > { %v1111_v57 = vpop.f32.mrf.mxu2  ;;  %v1200_v58 = vpop.f32.mrf.mxu3 }
 0x21e   : > { %v1112_v49 = vadd.f32 %v2136_v21, %v1111_v57 }
 0x220   : > { %v1201_v59 = vadd.f32 %v1200_v58, %v1112_v49 }
 0x222   : > { %1238 = vst [vmem:[%s2143_s30 + $0xe0] sm:$0xff] %v1201_v59 }
 0x225   : > { %v1113_v50 = vpop.f32.mrf.mxu2  ;;  %v1202_v60 = vpop.f32.mrf.mxu3 }
 0x226   : > { %v1114_v61 = vadd.f32 %v2136_v21, %v1113_v50 }
 0x228   : > { %v1203_v62 = vadd.f32 %v1202_v60, %v1114_v61 }
 0x22a   : > { %1239 = vst [vmem:[%s2143_s30 + $0xe8] sm:$0xff] %v1203_v62 }
 0x22d   : > { %v1116_v63 = vpop.f32.mrf.mxu2  ;;  %v1205_v0 = vpop.f32.mrf.mxu3 }
 0x22e   : > { %v1117_v1 = vadd.f32 %v2136_v21, %v1116_v63 }
 0x230   : > { %v1206_v2 = vadd.f32 %v1205_v0, %v1117_v1 }
 0x232   : > { %1240 = vst [vmem:[%s2143_s30 + $0xf0] sm:$0xff] %v1206_v2 }
 0x235   : > { %v1118_v3 = vpop.f32.mrf.mxu2  ;;  %v1207_v5 = vpop.f32.mrf.mxu3 }
 0x236   : > { %v1119_v4 = vadd.f32 %v2136_v21, %v1118_v3  ;;  %1249 = sbr.rel (!%p1923_p5) target bundleno = 602 (0x25a), region = 44 }
 0x238   : > { %v1208_v6 = vadd.f32 %v1207_v5, %v1119_v4 }
 0x23a   : > { %1241 = vst [vmem:[%s2143_s30 + $0xf8] sm:$0xff] %v1208_v6 }
 0x23b   : > { %s2309_s7 = smov (!%p1252_p11, %s1251_s7), 32 }
 0x23c   : > { %s1656_s8 = sshll.u32 %s2309_s7, 3 }
 0x23d   : > { %s1255_s9 = ssub.s32 256, %s1656_s8 }
 0x23e   : > { %s1256_s11 = sshll.u32 %s1255_s9, 4 }
 0x23f   : > { %1257 = vsyncadd %s2234_s6, %s1256_s11  ;;  %p2243_p12 = scmp.ne.s32.totalorder %s1656_s8, 0  ;;  %s1735_s28 = sshll.u32 %s1906_s22, 8 }
 0x240   : > { %s1260_s15 = scalar_lea.hbm %s2300_s5, %s1735_s28  ;;  %s1262_s16 = sshll.u32 %s2143_s30, 4  ;;  %s2252_s16 = int_to_ptr.vmem [resolvable:$true] %s1262_s16 }
 0x241   : > { %s1264_s17 = sshll.u32 %s1260_s15, 4  ;;  %s1660_s23 = sshll.u32 %s2309_s7, 7  ;;  %s2254_s17 = int_to_ptr.hbm [resolvable:$true] %s1264_s17 }
 0x242   : > { %s1777_s10 = sshra.s32 %s2252_s16, 4  ;;  %s1779_s25 = sshrl.u32 %s1660_s23, 4  ;;  %s1778_s10 = int_to_ptr.vmem [resolvable:$true] %s1777_s10 }
 0x243   : > { %s1784_s26 = scalar_lea.vmem %s1778_s10, %s1779_s25  ;;  %s1852_s22 = smov [#allocation3]  }
 0x244   : > { %p1785_p13 = scmp.ne.s32.totalorder %s1778_s10, %s1784_s26  ;;  %s1788_s8 = scalar_lea.vmem %s1852_s22, 512 }
 0x245   : > { %p1790_p2 = scmp.lt.s32.totalorder %s1788_s8, %s1784_s26 }
 0x246   : > { %p1786_p0 = pnand %p1785_p13, %p2243_p12 }
 0x248   : > { %p1787_p1 = pneg %p1786_p0 }
 0x24a   : > { %p1792_p3 = pnand %p1790_p2, %p1787_p1 }
 0x24c   : > { %1795 = shalt.err (!%p1792_p3)
}
 0x24d   : > { %s1796_s30 = sshra.s32 %s2254_s17, 4  ;;  %s1807_s14 = scalar_lea.hbm %s2300_s5, 304  ;;  %s1797_s30 = int_to_ptr.hbm [resolvable:$true] %s1796_s30 }
 0x24e   : > { %s1803_s9 = scalar_lea.hbm %s1797_s30, %s1779_s25  ;;  %p1808_p8 = scmp.lt.s32.totalorder %s1797_s30, %s2300_s5 }
 0x24f   : > { %p1804_p4 = scmp.ne.s32.totalorder %s1797_s30, %s1803_s9  ;;  %p1809_p9 = scmp.lt.s32.totalorder %s1807_s14, %s1803_s9 }
 0x251   : > { %p1805_p5 = pnand %p1804_p4, %p2243_p12  ;;  %p1810_p10 = por %p1809_p9, %p1808_p8 }
 0x253   : > { %p1806_p7 = pneg %p1805_p5 }
 0x255   : > { %p1811_p11 = pnand %p1810_p10, %p1806_p7 }
 0x257   : > { %1814 = shalt.err (!%p1811_p11)
}
 0x258   : > { %s1853_s10 = smov 128   ;;  %s1854_s25 = smov 8  }
 0x259   : > { %1270 = dma.vmem_to_hbm [thread:$0]  (%p2243_p12), %s2252_s16, %s1660_s23, %s2254_s17, %s2234_s6, %s1853_s10, %s1853_s10, %s1854_s25  }
 0x25a PF: > { %p1741_p13 = scmp.ge.s32.totalorder %s1850_s21, 2  ;;  %s1279_s26 = sand.u32 1, %s1838_s18  }
 0x25b   : > { %s1280_s22 = scalar_lea.sflag [#allocation4], %s1279_s26 }
 0x25c   : > { %p1738_p0 = pnand %p1741_p13, %p1927_p6 }
 0x25e   : > { %p1739_p1 = pneg %p1738_p0 }
 0x260   : > { %1833 = dma.done.wait (%p1739_p1), %s1280_s22, 4096  }
 0x261   : > { %1835 = vsyncadd (%p1739_p1), %s1280_s22, 4294963200  ;;  %p15_p2 = scmp.ge.s32.totalorder %s1910_s24, 4   ;;  %s2304_s18 = smov %s1842_s19 }
 0x262   : > { %s2305_s19 = smov %s1846_s20  ;;  %s2306_s20 = smov %s1921_s27 }
 0x263   : > { %s2307_s21 = smov %s1910_s24  ;;  %17 = sbr.rel (!%p15_p2) target bundleno = 3 (0x3), region = 75 }
 0x268   :  { %1286 = vsyncpa [#allocation4], 1 }
 0x269   :  { %1288 = vsyncpa [#allocation4 + $0x1], 1 }

</bundles_post_ra>
